<compile_context>
chip_gen: v7x
topology: tpu7x:2x2x1
jax: 0.10.0
libtpu: 0.0.40
codegen_flags: <defaults>
</compile_context>

<pallas_src>
import math
import functools

import jax
import jax.numpy as jnp
from jax.experimental import pallas as pl
from jax.experimental.pallas import tpu as pltpu


def _data_embedding_kernel(x_ref, w_ref, pe_ref, o_ref):
    # x_ref : (bb, L, 3C)  im2col'd circular-conv inputs (resident across the d axis)
    # w_ref : (3C, td)     fused conv-1d weight slab
    # pe_ref: (L,  td)     positional-embedding slab (NOT tiled to bb rows)
    # o_ref : (bb, L, td)
    bb, l, c3 = x_ref.shape
    td = o_ref.shape[-1]
    x2 = x_ref[...].reshape(bb * l, c3)            # merge leading dims (free when L%8==0)
    acc = jnp.dot(x2, w_ref[...], preferred_element_type=jnp.float32)
    acc = acc.reshape(bb, l, td) + pe_ref[...][None, :, :].astype(jnp.float32)
    o_ref[...] = acc.astype(o_ref.dtype)


def _largest_divisor_leq(n, k):
    k = max(1, min(n, k))
    while k > 1 and n % k != 0:
        k -= 1
    return k


def _vmem_budget_bytes():
    # Physical VMEM minus headroom for the compiler's internal scratch:
    # ~48 MiB on 64 MiB parts (v7x), ~96 MiB on 128 MiB parts (v5e/v6e).
    cap = 64 * 1024 * 1024
    try:
        info = pltpu.get_tpu_info()
        cap = int(getattr(info, "vmem_capacity_bytes", cap)) or cap
    except Exception:
        pass
    return max(32 * 1024 * 1024, (cap * 3) // 4)


@functools.partial(jax.jit, static_argnames=("block_b", "block_d"))
def data_embedding(x, w_kcd, pe, *, block_b=None, block_d=None):
    B, L, C = x.shape
    K, Cw, D = w_kcd.shape
    assert K == 3 and Cw == C
    out_dtype = x.dtype

    # ---- wrapper-side layout plumbing (kernel = one dot + one broadcast-add)
    # im2col for the circular k=3 conv: last-dim columns are [x[t-1], x[t], x[t+1]],
    # matching the row-major (K, C, D) -> (3C, D) weight reshape below.
    x3 = jnp.concatenate(
        [jnp.roll(x, 1, axis=1), x, jnp.roll(x, -1, axis=1)], axis=-1)   # (B, L, 3C)
    w2 = w_kcd.reshape(3 * C, D)
    pe2 = pe[:L].astype(out_dtype)       # PE stream in the model dtype (bf16-friendly)

    vmem_budget = _vmem_budget_bytes()
    out_isz = jnp.dtype(out_dtype).itemsize

    def _blk_bytes(bb, bd):
        return (bb * L * 3 * C * x3.dtype.itemsize
                + 3 * C * bd * w2.dtype.itemsize
                + L * bd * pe2.dtype.itemsize
                + bb * L * bd * out_isz)

    # ---- D tiling: lane-dense slabs when D is 128-aligned; otherwise a single
    # full-extent D block (avoids padding AND the post-call slice copy) unless it
    # cannot fit in VMEM even with block_b = 1.
    if D % 128 == 0:
        D_pad, padded = D, False
    elif 2 * _blk_bytes(1, D) <= vmem_budget:
        D_pad, padded = D, False
    else:
        D_pad, padded = ((D + 127) // 128) * 128, True
        w2 = jnp.pad(w2, ((0, 0), (0, D_pad - D)))
        pe2 = jnp.pad(pe2, ((0, 0), (0, D_pad - D)))

    if D_pad % 128 == 0:
        if block_d is None:
            block_d = 1024 if vmem_budget >= 72 * 1024 * 1024 else 512
        block_d = min(((block_d + 127) // 128) * 128, D_pad)
    else:
        block_d = D_pad                  # full-extent last-dim block (block == array dim)
    nd = pl.cdiv(D_pad, block_d)

    # ---- row (batch) tiling: bigger tiles on 128 MiB parts, divisor of B when
    # possible (no partial/masked row block), >= 2 grid steps for dual-TC parts.
    if block_b is None:
        target_rows = 2048 if vmem_budget >= 72 * 1024 * 1024 else 1024
        block_b = max(1, min(B, target_rows // max(L, 1)))
        bb_div = _largest_divisor_leq(B, block_b)
        if bb_div >= max(1, block_b // 2):
            block_b = bb_div
    block_b = max(1, min(block_b, B))

    if nd * pl.cdiv(B, block_b) < 2 and B >= 2:
        block_b = _largest_divisor_leq(B, (B + 1) // 2)

    # shrink the row block until the double-buffered footprint fits in the budget
    while block_b > 1 and 2 * _blk_bytes(block_b, block_d) > vmem_budget:
        block_b = _largest_divisor_leq(B, block_b - 1)

    nb = pl.cdiv(B, block_b)
    blk = _blk_bytes(block_b, block_d)
    vmem_limit = int(min(vmem_budget, max(16 * 1024 * 1024, 3 * blk)))

    out = pl.pallas_call(
        _data_embedding_kernel,
        out_shape=jax.ShapeDtypeStruct((B, L, D_pad), out_dtype),
        grid_spec=pltpu.PrefetchScalarGridSpec(
            num_scalar_prefetch=0,
            # rows outer, D inner: the (block_b, L, 3C) im2col tile stays resident
            # across the D axis; only the small W / PE slabs are re-fetched.
            grid=(nb, nd),
            in_specs=[
                pl.BlockSpec((block_b, L, 3 * C), lambda r, d: (r, 0, 0)),
                pl.BlockSpec((3 * C, block_d), lambda r, d: (0, d)),
                pl.BlockSpec((L, block_d), lambda r, d: (0, d)),
            ],
            out_specs=pl.BlockSpec((block_b, L, block_d), lambda r, d: (r, 0, d)),
        ),
        compiler_params=pltpu.CompilerParams(
            dimension_semantics=("parallel", "parallel"),
            vmem_limit_bytes=vmem_limit),
    )(x3, w2, pe2)

    if padded:
        # TODO(synk): prefer d_model % 128 == 0 (or fuse this slice into the next
        # op) — this slice is a full extra read+write of the output outside the
        # kernel; it is only taken when a full-extent D block cannot fit in VMEM.
        out = out[..., :D]
    return out


def make_positional_embedding(seq_len, d_model):
    position = jnp.arange(seq_len, dtype=jnp.float32)[:, None]            # (L, 1)
    div_term = jnp.exp(jnp.arange(0, d_model, 2, dtype=jnp.float32)
                       * -(math.log(10000.0) / d_model))                  # (D/2,)
    pe = jnp.zeros((seq_len, d_model), dtype=jnp.float32)
    pe = pe.at[:, 0::2].set(jnp.sin(position * div_term))
    pe = pe.at[:, 1::2].set(jnp.cos(position * div_term))
    return pe


def make_conv_weight(key, c_in, d_model, kernel_size=3):
    # Kaiming normal, fan_in = c_in * kernel_size, leaky_relu gain (slope 0.01)
    fan_in = c_in * kernel_size
    gain = math.sqrt(2.0 / (1.0 + 0.01 ** 2))
    std = gain / math.sqrt(fan_in)
    w_dck = std * jax.random.normal(key, (d_model, c_in, kernel_size),
                                    dtype=jnp.float32)     # PyTorch layout (D, C, K)
    # kernel layout (K, C, D): tap k multiplies x[t - 1 + k]
    return jnp.transpose(w_dck, (2, 1, 0))


def reference_data_embedding(x, w_kcd, pe):
    # pure-JAX reference of circular conv1d (k=3, pad=1) + positional embedding
    x_m1 = jnp.roll(x, shift=1, axis=1)
    x_p1 = jnp.roll(x, shift=-1, axis=1)
    out = (jnp.einsum('blc,cd->bld', x_m1, w_kcd[0])
           + jnp.einsum('blc,cd->bld', x,    w_kcd[1])
           + jnp.einsum('blc,cd->bld', x_p1, w_kcd[2]))
    return out + pe[None]


if __name__ == "__main__":
    B, L, C_IN, D_MODEL = 2, 8, 4, 32

    key = jax.random.PRNGKey(0)
    kx, kw = jax.random.split(key)

    x = jax.random.normal(kx, (B, L, C_IN), dtype=jnp.float32)
    w_kcd = make_conv_weight(kw, C_IN, D_MODEL, kernel_size=3)
    pe = make_positional_embedding(L, D_MODEL)

    out = data_embedding(x, w_kcd, pe)
    out = jax.block_until_ready(out)

    ref = reference_data_embedding(x, w_kcd, pe)
    assert out.shape == (B, L, D_MODEL)
    assert jnp.allclose(out, ref, atol=1e-4, rtol=1e-4), "mismatch vs reference"

    # TODO(synk): DAIN_Layer (norm=True path) and dropout>0 are not exercised by
    # the default DataEmbedding config and are omitted from the kernel.
    print("KERNEL_OK")
</pallas_src>

<mosaic_0001>
module attributes {stable_mosaic.version = 11 : i64} {
  func.func @_data_embedding_kernel(%arg0: i32, %arg1: i32, %arg2: memref<1x8x12xf32, #tpu.memory_space<vmem>>, %arg3: memref<12x32xf32, #tpu.memory_space<vmem>>, %arg4: memref<8x32xf32, #tpu.memory_space<vmem>>, %arg5: memref<1x8x32xf32, #tpu.memory_space<vmem>>) attributes {dimension_semantics = [#tpu.dimension_semantics<parallel>, #tpu.dimension_semantics<parallel>], iteration_bounds = array<i64: 2, 1>, scalar_prefetch = 0 : i64, scratch_operands = 0 : i64, tpu.core_type = #tpu.core_type<tc>, window_params = [{transform_indices = @transform_0, window_bounds = array<i64: 1, 8, 12>}, {transform_indices = @transform_1, window_bounds = array<i64: 12, 32>}, {transform_indices = @transform_2, window_bounds = array<i64: 8, 32>}, {transform_indices = @transform_3, window_bounds = array<i64: 1, 8, 32>}]} {
    %c0 = arith.constant 0 : index
    %c0_0 = arith.constant 0 : index
    %c0_1 = arith.constant 0 : index
    %0 = vector.load %arg2[%c0, %c0_0, %c0_1] : memref<1x8x12xf32, #tpu.memory_space<vmem>>, vector<1x8x12xf32>
    %1 = vector.shape_cast %0 : vector<1x8x12xf32> to vector<8x12xf32>
    %c0_2 = arith.constant 0 : index
    %c0_3 = arith.constant 0 : index
    %2 = vector.load %arg3[%c0_2, %c0_3] : memref<12x32xf32, #tpu.memory_space<vmem>>, vector<12x32xf32>
    %cst = arith.constant dense<0.000000e+00> : vector<8x32xf32>
    %3 = tpu.matmul %1, %2, %cst {dimension_numbers = #tpu.dot_dimension_numbers<[1], [0], [0], [1], [0, 0, 1, 1], [], []>} : vector<8x12xf32>, vector<12x32xf32>, vector<8x32xf32> -> vector<8x32xf32>
    %4 = vector.shape_cast %3 : vector<8x32xf32> to vector<1x8x32xf32>
    %c0_4 = arith.constant 0 : index
    %c0_5 = arith.constant 0 : index
    %5 = vector.load %arg4[%c0_4, %c0_5] : memref<8x32xf32, #tpu.memory_space<vmem>>, vector<8x32xf32>
    %6 = vector.shape_cast %5 : vector<8x32xf32> to vector<1x8x32xf32>
    %7 = arith.addf %4, %6 : vector<1x8x32xf32>
    %c0_6 = arith.constant 0 : index
    %c0_7 = arith.constant 0 : index
    %c0_8 = arith.constant 0 : index
    %8 = vector.load %arg5[%c0_6, %c0_7, %c0_8] : memref<1x8x32xf32, #tpu.memory_space<vmem>>, vector<1x8x32xf32>
    tpu.vector_store %arg5[%c0_6, %c0_7, %c0_8], %7 {strides = array<i32>} : memref<1x8x32xf32, #tpu.memory_space<vmem>>, vector<1x8x32xf32>,
    return
  }
  func.func @transform_0(%arg0: i32, %arg1: i32) -> (i32, i32, i32) {
    %c0_i32 = arith.constant 0 : i32
    %c0_i32_0 = arith.constant 0 : i32
    %c0_i32_1 = arith.constant 0 : i32
    return %arg0, %c0_i32, %c0_i32_0 : i32, i32, i32
  }
  func.func @transform_1(%arg0: i32, %arg1: i32) -> (i32, i32) {
    %c0_i32 = arith.constant 0 : i32
    %c0_i32_0 = arith.constant 0 : i32
    return %c0_i32, %arg1 : i32, i32
  }
  func.func @transform_2(%arg0: i32, %arg1: i32) -> (i32, i32) {
    %c0_i32 = arith.constant 0 : i32
    %c0_i32_0 = arith.constant 0 : i32
    return %c0_i32, %arg1 : i32, i32
  }
  func.func @transform_3(%arg0: i32, %arg1: i32) -> (i32, i32, i32) {
    %c0_i32 = arith.constant 0 : i32
    %c0_i32_0 = arith.constant 0 : i32
    return %arg0, %c0_i32, %arg1 : i32, i32, i32
  }
}

</mosaic_0001>

<bundles_post_ra>
// kernel: data_embedding.1
= control target key start
LH: loop header
LB: loop body
LE: loop exit
PB: predicated region body
PF: predicated region fallthrough
CT: control target
= control target key end

     0   :  { %8 = vsyncpa [#allocation3], 0  ;;  %s726_s0 = inlined_call_operand.vmem [shape: f32[2,8,12], index: 0, kind: input, shape index: {}]   ;;  %s727_s1 = inlined_call_operand.vmem [shape: f32[12,32], index: 1, kind: input, shape index: {}]   ;;  %s728_s2 = inlined_call_operand.vmem [shape: f32[8,32], index: 2, kind: input, shape index: {}]   ;;  %s729_s3 = inlined_call_operand.hbm [shape: f32[2,8,32], index: 3, kind: output, shape index: {}]  }
   0x1   :  { %10 = vsyncpa [#allocation3 + $0x1], 0  ;;  %s605_s12 = smov 0   ;;  %s607_s13 = smov 0  }
   0x2   :  { %s609_s14 = smov 0   ;;  %s611_s15 = smov 0  }
   0x3   :  { %s613_s16 = smov 0   ;;  %s615_s17 = smov 0  }
   0x4 LB: > { %s412_s18 = sadd.s32 4294967295, %s578_s17   ;;  %s413_s19 = sadd.s32 4294967294, %s578_s17   ;;  %s578_s17 = sphi %s615_s17, %s16_s17   ;;  %s574_s16 = sphi %s613_s16, %s736_s16   ;;  %s570_s15 = sphi %s611_s15, %s735_s15   ;;  %s566_s14 = sphi %s609_s14, %s734_s14   ;;  %s562_s13 = sphi %s607_s13, %s733_s13   ;;  %s558_s12 = sphi %s605_s12, %s732_s12  }
   0x5   : > { %s28_s20 = sadd.s32 1, %s574_s16  ;;  %s115_s21 = sadd.s32 1, %s566_s14 }
   0x6   : > { %p30_p0 = scmp.ge.s32.totalorder %s28_s20, 2  ;;  %p125_p1 = scmp.ne.s32.totalorder %s566_s14, %s562_s13 }
   0x7   : > { %p126_p2 = scmp.eq.s32.totalorder %s412_s18, 1  ;;  %p131_p3 = scmp.ne.s32.totalorder %s562_s13, %s558_s12 }
   0x8   : > { %s738_s20 = smov (%p30_p0, %s28_s20), 0  ;;  %p132_p5 = scmp.eq.s32.totalorder %s413_s19, 1 }
   0x9   : > { %p645_p4 = por %p126_p2, %p125_p1  ;;  %s110_s23 = ssub.s32 %s574_s16, %s738_s20 }
   0xa   : > { %p418_p6 = scmp.ge.s32.totalorder %s578_s17, 1  ;;  %p113_p7 = scmp.eq.s32.totalorder %s110_s23, 0 }
   0xb   : > { %p652_p8 = por %p132_p5, %p131_p3  ;;  %p171_p9 = scmp.lt.s32.totalorder %s578_s17, 3 }
   0xc   : > { %s658_s25 = scalar_select %p113_p7, %s566_s14, %s115_s21  }
   0xd   : > { %p172_p10 = pnand %p418_p6, %p171_p9 }
   0xe   : > { %v215_v0 = vld [vmem:[%s727_s1] sm:$0xff] (!%p172_p10)  ;;  %v216_v1 = vld [vmem:[%s727_s1 + $0x8] sm:$0xf] (!%p172_p10)  ;;  %vm221_vm0 = vcmask (!%p172_p10), 1043456   ;;  %v580_v2 = vmov (!%p172_p10), 0.0|0.0   ;;  %vm581_vm1 = vmmov (!%p172_p10), 1  }
   0xf   : > { %175 = sbr.rel (%p172_p10) target bundleno = 255 (0xff), region = 32  ;;  %437 = vmatprep.subr.bf16.mxu0 (!%p172_p10), %v580_v2  ;;  %v438_v3 = vpack.c.bf16 (!%p172_p10), %v216_v1, %v215_v0  ;;  %vm439_vm2 = vmpackc.low (!%p172_p10), %vm221_vm0, %vm581_vm1  ;;  %p202_p11 = scmp.lt.s32.totalorder (!%p172_p10), %s570_s15, 1  ;;  %vm582_vm3 = vmmov (!%p172_p10), 0   ;;  %v583_v4 = vmov (!%p172_p10), 0.0   ;;  %vm217_vm4 = vcmask (!%p172_p10), 97280   ;;  %v295_v6 = vld [vmem:[%s728_s2] sm:$0xff] (!%p172_p10) }
  0x10   : > { %434 = vmatprep.mubr.msk.f32.mxu0 (!%p172_p10), %vm582_vm3, %v583_v4  ;;  %s199_s8 = sand.u32 (!%p172_p10), 1, %s562_s13   ;;  %s424_s18 = sshll.u32 (!%p172_p10), %s570_s15, 7  ;;  %vm297_vm5 = vcmask (!%p172_p10), 261120  }
  0x11   : > { %440 = vmatpush3.bf16.msk.msra.mxu0 (!%p172_p10), %vm439_vm2, %v438_v3  ;;  %s419_s9 = sshll.u32 (!%p172_p10), %s199_s8, 3  ;;  %s679_s27 = scalar_lea.hbm (!%p172_p10), %s729_s3, %s424_s18 }
  0x12   : > { %s201_s19 = scalar_lea.vmem (!%p172_p10), [#allocation2], %s419_s9  ;;  %s300_s28 = scalar_lea.sflag (!%p172_p10), [#allocation3], %s199_s8 }
  0x13   : > { %s314_s21 = sshll.u32 (!%p172_p10), %s201_s19, 4  ;;  %s681_s21 = int_to_ptr.vmem [resolvable:$true] %s314_s21 }
  0x14   : > { %s500_s29 = scalar_lea.vmem (!%p172_p10), %s681_s21, 128 }
  0x15   : > { %p501_p12 = scmp.ne.s32.totalorder (!%p172_p10), %s681_s21, %s500_s29 }
  0x16   : > { %s203_s30 = scalar_select %p202_p11, %s570_s15, 1 }
  0x17   : > { %p502_p13 = pnand %p501_p12, %p645_p4  ;;  %s584_s15 = smov [#allocation2]  }
  0x18   : > { %s420_s4 = sshll.u32 %s203_s30, 3  ;;  %s504_s30 = sshll.u32 %s584_s15, 4  ;;  %s505_s30 = int_to_ptr.vmem [resolvable:$false] %s504_s30 }
  0x19   : > { %s205_s7 = scalar_lea.vmem %s726_s0, %s420_s4  ;;  %p503_p0 = pneg %p502_p13 }
  0x1a   : > { %v214_v5 = vld [vmem:[%s205_s7] sm:$0xff]  ;;  %s506_s4 = scalar_lea.vmem %s505_s30, 256  ;;  %p507_p1 = scmp.lt.s32.totalorder %s681_s21, %s505_s30 }
  0x1b   : > { %435 = vmatmul.mubr.msk.f32.vlgmr.msra.gmra.mrb[0].mxu0 %vm217_vm4, %v214_v5  ;;  %p508_p2 = scmp.lt.s32.totalorder %s506_s4, %s500_s29 }
  0x1d   : > { %p509_p3 = por %p508_p2, %p507_p1 }
  0x1f   : > { %p510_p5 = pnand %p509_p3, %p503_p0 }
  0xee   : > { %v291_v7 = vpop.f32.mrb[0].mxu0 }
  0xef   : > { %v296_v8 = vadd.f32 %v295_v6, %v291_v7  ;;  %v436_v9 = vpop.f32.mrb[1].mxu0 }
  0xf1   : > { %298 = vst.msk [vmem:[%s201_s19] sm:$0xff] %vm297_vm5, %v296_v8 }
  0xf2   : > { %513 = shalt.err (!%p510_p5)
}
  0xf3   : > { %s514_s5 = scalar_lea.hbm %s679_s27, 128  ;;  %s518_s8 = scalar_lea.hbm %s729_s3, 256 }
  0xf4   : > { %p515_p6 = scmp.ne.s32.totalorder %s679_s27, %s514_s5  ;;  %p519_p10 = scmp.lt.u32.totalorder %s679_s27, %s729_s3 }
  0xf5   : > { %p520_p11 = scmp.lt.u32.totalorder %s518_s8, %s514_s5  ;;  %p522_p13 = scmp.lt.u32.totalorder %s514_s5, %s679_s27 }
  0xf6   : > { %p516_p7 = pnand %p515_p6, %p645_p4 }
  0xf7   : > { %p521_p12 = por %p520_p11, %p519_p10 }
  0xf8   : > { %p517_p9 = pneg %p516_p7 }
  0xf9   : > { %p523_p0 = por %p522_p13, %p521_p12 }
  0xfb   : > { %p524_p1 = pnand %p523_p0, %p517_p9 }
  0xfd   : > { %527 = shalt.err (!%p524_p1)
}
  0xfe   : > { %441 = dma.vmem_to_hbm [thread:$0]  (%p645_p4), %s681_s21, 128, %s679_s27, %s300_s28  }
  0xff PF: > { %p447_p2 = scmp.ge.s32.totalorder %s578_s17, 2  ;;  %s326_s11 = sand.u32 1, %s558_s12  }
 0x100   : > { %s327_s18 = scalar_lea.sflag [#allocation3], %s326_s11 }
 0x101   : > { %p444_p3 = pnand %p447_p2, %p652_p8 }
 0x103   : > { %553 = dma.done.wait (!%p444_p3), %s327_s18, 128  }
 0x104   : > { %555 = vsyncadd (!%p444_p3), %s327_s18, 4294967168  ;;  %s16_s17 = sadd.s32 1, %s578_s17   ;;  %s732_s12 = smov %s562_s13 }
 0x105   : > { %p13_p5 = scmp.ge.s32.totalorder %s16_s17, 4   ;;  %s733_s13 = smov %s566_s14 }
 0x106   : > { %s734_s14 = smov %s658_s25  ;;  %s735_s15 = smov %s574_s16 }
 0x107   : > { %s736_s16 = smov %s738_s20  ;;  %15 = sbr.rel (!%p13_p5) target bundleno = 4 (0x4), region = 73 }
 0x10e   :  { %332 = vsyncpa [#allocation3], 1 }
 0x10f   :  { %334 = vsyncpa [#allocation3 + $0x1], 1 }

</bundles_post_ra>
